<compile_context>
chip_gen: v7x
topology: tpu7x:2x2x1
jax: 0.10.0
libtpu: 0.0.40
codegen_flags: <defaults>
</compile_context>

<pallas_src>
import jax
import jax.numpy as jnp
from jax import lax
from jax.experimental import pallas as pl
from jax.experimental.pallas import tpu as pltpu

NEGPOS_RATIO = 3
IOU_THRESHOLD = 0.5
VARIANCES = (0.1, 0.2)


def _ssd_loss_kernel(tgt_ref, prior_ref, loc_ref, conf_ref,
                     loss_loc_ref, loss_c_ref, num_pos_ref):
    G = tgt_ref.shape[1]
    P = prior_ref.shape[1]
    C = conf_ref.shape[1]
    f32 = jnp.float32

    # ------------------- matching (everything lane-dense over P) -------------
    tgt = tgt_ref[0]                       # (G, 5)  rows = [label, x1, y1, x2, y2]
    labels = tgt[:, 0:1]                   # (G, 1)
    gx1 = tgt[:, 1:2]
    gy1 = tgt[:, 2:3]
    gx2 = tgt[:, 3:4]
    gy2 = tgt[:, 4:5]

    pcx = prior_ref[0:1, :]                # (1, P)   precomputed prior constants
    pcy = prior_ref[1:2, :]
    px1 = prior_ref[2:3, :]
    py1 = prior_ref[3:4, :]
    px2 = prior_ref[4:5, :]
    py2 = prior_ref[5:6, :]
    area_p = prior_ref[6:7, :]
    inv_sw = prior_ref[7:8, :]             # 1 / (var0 * pw)
    inv_sh = prior_ref[8:9, :]             # 1 / (var0 * ph)
    log_pw = prior_ref[9:10, :]
    log_ph = prior_ref[10:11, :]

    # IoU between every gt (sublanes) and every prior (lanes): (G, P)
    iw = jnp.maximum(jnp.minimum(gx2, px2) - jnp.maximum(gx1, px1), 0.0)
    ih = jnp.maximum(jnp.minimum(gy2, py2) - jnp.maximum(gy1, py1), 0.0)
    inter = iw * ih
    area_g = (gx2 - gx1) * (gy2 - gy1)
    denom = area_g + area_p - inter
    safe_denom = jnp.where(denom > 0.0, denom, 1.0)      # guard degenerate boxes
    iou = jnp.where(denom > 0.0, inter / safe_denom, 0.0)

    valid = labels > 0.0                   # (G, 1); label <= 0 means "no object"
    iou = jnp.where(valid, iou, -1.0)

    g_iota = lax.broadcasted_iota(jnp.int32, (G, P), 0)
    p_iota = lax.broadcasted_iota(jnp.int32, (G, P), 1)

    bto = jnp.max(iou, axis=0, keepdims=True)                               # (1, P)
    bti = jnp.min(jnp.where(iou == bto, g_iota, G), axis=0, keepdims=True)  # (1, P)
    bpo = jnp.max(iou, axis=1, keepdims=True)                               # (G, 1)
    bpi = jnp.min(jnp.where(iou == bpo, p_iota, P), axis=1, keepdims=True)  # (G, 1)

    # force-match: each valid gt claims its best prior (later gt wins, as in torch loop)
    force = jnp.logical_and(p_iota == bpi, valid)
    forced_j = jnp.max(jnp.where(force, g_iota, -1), axis=0, keepdims=True)
    has_force = forced_j >= 0
    bti = jnp.where(has_force, forced_j, bti)
    bto = jnp.where(has_force, 2.0, bto)

    oh = (g_iota == bti).astype(f32)                     # (G, P) one-hot over gts

    # MXU gather of [label, x1, y1, x2, y2] -> (5, P) = tgt^T @ oh
    matched = lax.dot_general(tgt, oh, (((0,), (0,)), ((), ())),
                              preferred_element_type=f32)
    mlab = matched[0:1, :]
    mx1 = matched[1:2, :]
    my1 = matched[2:3, :]
    mx2 = matched[3:4, :]
    my2 = matched[4:5, :]

    below = bto < IOU_THRESHOLD                          # (1, P)
    lab_f = jnp.where(below, 0.0, mlab)                  # (1, P) ~integer-valued
    # round before the int cast (MXU f32 matmul may return 6.9999995 for 7.0)
    tgt_cls = (lab_f + 0.5).astype(jnp.int32)            # (1, P) class per prior
    pos_row = tgt_cls > 0                                # (1, P) bool
    num_pos_f = jnp.sum(pos_row.astype(f32))

    # ------------- encode matched boxes w.r.t. priors -> (4, P) ---------------
    mcx = 0.5 * (mx1 + mx2)
    mcy = 0.5 * (my1 + my2)
    mw = mx2 - mx1
    mh = my2 - my1
    ecx = (mcx - pcx) * inv_sw
    ecy = (mcy - pcy) * inv_sh
    ew = (jnp.log(jnp.maximum(mw, 1e-8)) - log_pw) * (1.0 / VARIANCES[1])
    eh = (jnp.log(jnp.maximum(mh, 1e-8)) - log_ph) * (1.0 / VARIANCES[1])
    enc = jnp.concatenate([ecx, ecy, ew, eh], axis=0)    # (4, P)

    # ---------------- localization loss (smooth L1 on positives, summed) -----
    lp = loc_ref[0]                                      # (4, P) lane-dense
    ad = jnp.abs(lp - enc)
    sl1 = jnp.where(ad < 1.0, 0.5 * ad * ad, ad - 0.5)
    loss_loc = jnp.sum(jnp.where(pos_row, sl1, 0.0))

    # ---------------- per-prior CE loss in lane-dense (C, P) layout ----------
    cp = conf_ref[0]                                     # (C, P)
    cmax = jnp.max(cp, axis=0, keepdims=True)            # (1, P)
    lse = jnp.log(jnp.sum(jnp.exp(cp - cmax), axis=0, keepdims=True)) + cmax
    c_iota = lax.broadcasted_iota(jnp.int32, (C, P), 0)
    gathered = jnp.sum(jnp.where(c_iota == tgt_cls, cp, 0.0),
                       axis=0, keepdims=True)            # (1, P)
    lc_full = lse - gathered                             # (1, P) full CE per prior
    lc_mine = jnp.where(pos_row, 0.0, lc_full)           # positives zeroed for mining

    # -------- hard negative mining: exact top-K via bitwise threshold search --
    # Keys are the non-negative mining losses bitcast to int32 (monotone order).
    key = pltpu.bitcast(jnp.maximum(lc_mine, 0.0), jnp.int32)   # (1, P)
    K = jnp.minimum(f32(NEGPOS_RATIO) * num_pos_f, f32(P - 1))  # per-image num_neg

    # T = K-th largest key = max{t : #{key >= t} >= K}, built bit by bit (31 bits).
    def val_bit(_, carry):
        t, bit = carry
        cand = t | bit
        cnt = jnp.sum((key >= cand).astype(f32))
        t = jnp.where(cnt >= K, cand, t)
        return (t, jnp.right_shift(bit, 1))

    T, _ = lax.fori_loop(0, 31, val_bit, (jnp.int32(0), jnp.int32(1 << 30)))

    gt_mask = key > T                                    # always selected
    eq_mask = key == T                                   # tie region
    cnt_gt = jnp.sum(gt_mask.astype(f32))
    need_eq = K - cnt_gt                                 # how many ties to take

    # Index tie-break: take the need_eq tie elements with the smallest indices.
    # M = max{m : #{eq & idx < m} <= need_eq}; select eq & (idx < M).
    idx_row = lax.broadcasted_iota(jnp.int32, (1, P), 1)
    nbits = max(int(P).bit_length(), 1)

    def idx_bit(_, carry):
        m, bit = carry
        cand = m + bit
        cnt = jnp.sum(jnp.logical_and(eq_mask, idx_row < cand).astype(f32))
        m = jnp.where(cnt <= need_eq, cand, m)
        return (m, jnp.right_shift(bit, 1))

    M, _ = lax.fori_loop(0, nbits, idx_bit,
                         (jnp.int32(0), jnp.int32(1 << (nbits - 1))))

    selected = jnp.logical_or(gt_mask, jnp.logical_and(eq_mask, idx_row < M))
    neg_row = jnp.logical_and(selected, jnp.logical_not(pos_row))

    # CE summed over (pos | neg); at negatives the mining loss equals the full loss.
    union = jnp.logical_or(pos_row, neg_row)
    loss_c = jnp.sum(jnp.where(union, lc_full, 0.0))

    # ---------------- per-image partials (batch reduction in wrapper) --------
    loss_loc_ref[...] = jnp.full((1, 1, 1), loss_loc, f32)
    loss_c_ref[...] = jnp.full((1, 1, 1), loss_c, f32)
    num_pos_ref[...] = jnp.full((1, 1, 1), num_pos_f, f32)


def ssd_layer_loss(loc_p, conf_p, priorbox, targets):
    """loc_p (n,P,4), conf_p (n,P,C), priorbox (P,4) center-size, targets (n,G,5)."""
    n, P, C = conf_p.shape
    G = targets.shape[1]
    f32 = jnp.float32

    # Prior-derived constants hoisted out of the per-image kernel body (11, P).
    pr = priorbox.astype(f32)
    pcx, pcy, pw, ph = pr[:, 0], pr[:, 1], pr[:, 2], pr[:, 3]
    prior_slab = jnp.stack([
        pcx, pcy,
        pcx - 0.5 * pw, pcy - 0.5 * ph,
        pcx + 0.5 * pw, pcy + 0.5 * ph,
        pw * ph,
        1.0 / (VARIANCES[0] * pw), 1.0 / (VARIANCES[0] * ph),
        jnp.log(pw), jnp.log(ph),
    ], axis=0)

    # Lane-dense layouts: predictions enter the kernel as (n, 4, P) / (n, C, P).
    loc_t_in = jnp.transpose(loc_p.astype(f32), (0, 2, 1))
    conf_t_in = jnp.transpose(conf_p.astype(f32), (0, 2, 1))

    ll, lc, npos = pl.pallas_call(
        _ssd_loss_kernel,
        out_shape=(
            jax.ShapeDtypeStruct((n, 1, 1), f32),   # per-image loss_loc
            jax.ShapeDtypeStruct((n, 1, 1), f32),   # per-image loss_c
            jax.ShapeDtypeStruct((n, 1, 1), f32),   # per-image num_pos
        ),
        grid=(n,),
        in_specs=[
            pl.BlockSpec((1, G, 5), lambda i: (i, 0, 0)),    # targets
            pl.BlockSpec((11, P), lambda i: (0, 0)),         # prior slab (grid-invariant)
            pl.BlockSpec((1, 4, P), lambda i: (i, 0, 0)),    # loc_p, lane-dense
            pl.BlockSpec((1, C, P), lambda i: (i, 0, 0)),    # conf_p, lane-dense
        ],
        out_specs=(
            pl.BlockSpec((1, 1, 1), lambda i: (i, 0, 0)),
            pl.BlockSpec((1, 1, 1), lambda i: (i, 0, 0)),
            pl.BlockSpec((1, 1, 1), lambda i: (i, 0, 0)),
        ),
        compiler_params=pltpu.CompilerParams(
            dimension_semantics=("parallel",),      # batch images are independent
            vmem_limit_bytes=32 * 1024 * 1024,
        ),
    )(targets.astype(f32), prior_slab, loc_t_in, conf_t_in)

    total_pos = jnp.sum(npos)
    # max(.,1) avoids NaN when the whole batch has no positives.
    return (jnp.sum(ll) + jnp.sum(lc)) / jnp.maximum(total_pos, 1.0)


if __name__ == "__main__":
    key = jax.random.PRNGKey(0)
    n, G, P, C = 2, 8, 128, 8

    # priors: 8x16 grid of centers, w = h = 0.3 (center-size form, normalized coords)
    gy = (jnp.arange(8, dtype=jnp.float32) + 0.5) / 8.0
    gx = (jnp.arange(16, dtype=jnp.float32) + 0.5) / 16.0
    cxg, cyg = jnp.meshgrid(gx, gy)
    priorbox = jnp.stack([cxg.reshape(-1), cyg.reshape(-1),
                          jnp.full((P,), 0.3, jnp.float32),
                          jnp.full((P,), 0.3, jnp.float32)], axis=1)        # (P, 4)

    k1, k2, k3, k4, k5 = jax.random.split(key, 5)
    ctr = jax.random.uniform(k1, (n, G, 2), minval=0.25, maxval=0.75)
    sz = jax.random.uniform(k2, (n, G, 2), minval=0.15, maxval=0.40)
    x1y1 = ctr - 0.5 * sz
    x2y2 = ctr + 0.5 * sz
    labels = jax.random.randint(k3, (n, G, 1), 1, C).astype(jnp.float32)
    valid_rows = (jnp.arange(G) < 5).astype(jnp.float32)[None, :, None]     # 5 objects / image
    labels = labels * valid_rows                                            # label 0 => padding
    targets = jnp.concatenate([labels, x1y1, x2y2], axis=-1)                # (n, G, 5)

    loc_p = 0.1 * jax.random.normal(k4, (n, P, 4), dtype=jnp.float32)
    conf_p = jax.random.normal(k5, (n, P, C), dtype=jnp.float32)

    loss = jax.jit(ssd_layer_loss)(loc_p, conf_p, priorbox, targets)
    loss = jax.block_until_ready(loss)
    assert jnp.isfinite(loss), f"non-finite loss: {loss}"
    print("KERNEL_OK")
</pallas_src>

<mosaic_0001>
module attributes {stable_mosaic.version = 11 : i64} {
  func.func @_ssd_loss_kernel(%arg0: i32, %arg1: memref<1x8x5xf32, #tpu.memory_space<vmem>>, %arg2: memref<11x128xf32, #tpu.memory_space<vmem>>, %arg3: memref<1x4x128xf32, #tpu.memory_space<vmem>>, %arg4: memref<1x8x128xf32, #tpu.memory_space<vmem>>, %arg5: memref<1x1x1xf32, #tpu.memory_space<vmem>>, %arg6: memref<1x1x1xf32, #tpu.memory_space<vmem>>, %arg7: memref<1x1x1xf32, #tpu.memory_space<vmem>>) attributes {dimension_semantics = [#tpu.dimension_semantics<parallel>], iteration_bounds = array<i64: 2>, scalar_prefetch = 0 : i64, scratch_operands = 0 : i64, tpu.core_type = #tpu.core_type<tc>, window_params = [{transform_indices = @transform_0, window_bounds = array<i64: 1, 8, 5>}, {pipeline_mode = #tpu.pipeline_mode<synchronous>, transform_indices = @transform_1, window_bounds = array<i64: 11, 128>}, {transform_indices = @transform_2, window_bounds = array<i64: 1, 4, 128>}, {transform_indices = @transform_3, window_bounds = array<i64: 1, 8, 128>}, {transform_indices = @transform_4, window_bounds = array<i64: 1, 1, 1>}, {transform_indices = @transform_5, window_bounds = array<i64: 1, 1, 1>}, {transform_indices = @transform_6, window_bounds = array<i64: 1, 1, 1>}]} {
    %c0 = arith.constant 0 : index
    %c0_0 = arith.constant 0 : index
    %c0_1 = arith.constant 0 : index
    %0 = vector.load %arg1[%c0, %c0_0, %c0_1] : memref<1x8x5xf32, #tpu.memory_space<vmem>>, vector<1x8x5xf32>
    %1 = vector.shape_cast %0 : vector<1x8x5xf32> to vector<8x5xf32>
    %2 = vector.extract_strided_slice %1 {offsets = [0, 0], sizes = [8, 1], strides = [1, 1]} : vector<8x5xf32> to vector<8x1xf32>
    %3 = vector.extract_strided_slice %1 {offsets = [0, 1], sizes = [8, 1], strides = [1, 1]} : vector<8x5xf32> to vector<8x1xf32>
    %4 = vector.extract_strided_slice %1 {offsets = [0, 2], sizes = [8, 1], strides = [1, 1]} : vector<8x5xf32> to vector<8x1xf32>
    %5 = vector.extract_strided_slice %1 {offsets = [0, 3], sizes = [8, 1], strides = [1, 1]} : vector<8x5xf32> to vector<8x1xf32>
    %6 = vector.extract_strided_slice %1 {offsets = [0, 4], sizes = [8, 1], strides = [1, 1]} : vector<8x5xf32> to vector<8x1xf32>
    %c0_2 = arith.constant 0 : index
    %c0_3 = arith.constant 0 : index
    %7 = vector.load %arg2[%c0_2, %c0_3] : memref<11x128xf32, #tpu.memory_space<vmem>>, vector<1x128xf32>
    %c1 = arith.constant 1 : index
    %c0_4 = arith.constant 0 : index
    %8 = vector.load %arg2[%c1, %c0_4] : memref<11x128xf32, #tpu.memory_space<vmem>>, vector<1x128xf32>
    %c2 = arith.constant 2 : index
    %c0_5 = arith.constant 0 : index
    %9 = vector.load %arg2[%c2, %c0_5] : memref<11x128xf32, #tpu.memory_space<vmem>>, vector<1x128xf32>
    %c3 = arith.constant 3 : index
    %c0_6 = arith.constant 0 : index
    %10 = vector.load %arg2[%c3, %c0_6] : memref<11x128xf32, #tpu.memory_space<vmem>>, vector<1x128xf32>
    %c4 = arith.constant 4 : index
    %c0_7 = arith.constant 0 : index
    %11 = vector.load %arg2[%c4, %c0_7] : memref<11x128xf32, #tpu.memory_space<vmem>>, vector<1x128xf32>
    %c5 = arith.constant 5 : index
    %c0_8 = arith.constant 0 : index
    %12 = vector.load %arg2[%c5, %c0_8] : memref<11x128xf32, #tpu.memory_space<vmem>>, vector<1x128xf32>
    %c6 = arith.constant 6 : index
    %c0_9 = arith.constant 0 : index
    %13 = vector.load %arg2[%c6, %c0_9] : memref<11x128xf32, #tpu.memory_space<vmem>>, vector<1x128xf32>
    %c7 = arith.constant 7 : index
    %c0_10 = arith.constant 0 : index
    %14 = vector.load %arg2[%c7, %c0_10] : memref<11x128xf32, #tpu.memory_space<vmem>>, vector<1x128xf32>
    %c8 = arith.constant 8 : index
    %c0_11 = arith.constant 0 : index
    %15 = vector.load %arg2[%c8, %c0_11] : memref<11x128xf32, #tpu.memory_space<vmem>>, vector<1x128xf32>
    %c9 = arith.constant 9 : index
    %c0_12 = arith.constant 0 : index
    %16 = vector.load %arg2[%c9, %c0_12] : memref<11x128xf32, #tpu.memory_space<vmem>>, vector<1x128xf32>
    %c10 = arith.constant 10 : index
    %c0_13 = arith.constant 0 : index
    %17 = vector.load %arg2[%c10, %c0_13] : memref<11x128xf32, #tpu.memory_space<vmem>>, vector<1x128xf32>
    %18 = vector.broadcast %5 : vector<8x1xf32> to vector<8x128xf32>
    %19 = vector.broadcast %11 : vector<1x128xf32> to vector<8x128xf32>
    %20 = arith.minimumf %18, %19 : vector<8x128xf32>
    %21 = vector.broadcast %3 : vector<8x1xf32> to vector<8x128xf32>
    %22 = vector.broadcast %9 : vector<1x128xf32> to vector<8x128xf32>
    %23 = arith.maximumf %21, %22 : vector<8x128xf32>
    %24 = arith.subf %20, %23 : vector<8x128xf32>
    %cst = arith.constant 0.000000e+00 : f32
    %25 = vector.broadcast %cst : f32 to vector<8x128xf32>
    %26 = arith.maximumf %24, %25 : vector<8x128xf32>
    %27 = vector.broadcast %6 : vector<8x1xf32> to vector<8x128xf32>
    %28 = vector.broadcast %12 : vector<1x128xf32> to vector<8x128xf32>
    %29 = arith.minimumf %27, %28 : vector<8x128xf32>
    %30 = vector.broadcast %4 : vector<8x1xf32> to vector<8x128xf32>
    %31 = vector.broadcast %10 : vector<1x128xf32> to vector<8x128xf32>
    %32 = arith.maximumf %30, %31 : vector<8x128xf32>
    %33 = arith.subf %29, %32 : vector<8x128xf32>
    %cst_14 = arith.constant 0.000000e+00 : f32
    %34 = vector.broadcast %cst_14 : f32 to vector<8x128xf32>
    %35 = arith.maximumf %33, %34 : vector<8x128xf32>
    %36 = arith.mulf %26, %35 : vector<8x128xf32>
    %37 = arith.subf %5, %3 : vector<8x1xf32>
    %38 = arith.subf %6, %4 : vector<8x1xf32>
    %39 = arith.mulf %37, %38 : vector<8x1xf32>
    %40 = vector.broadcast %39 : vector<8x1xf32> to vector<8x128xf32>
    %41 = vector.broadcast %13 : vector<1x128xf32> to vector<8x128xf32>
    %42 = arith.addf %40, %41 : vector<8x128xf32>
    %43 = arith.subf %42, %36 : vector<8x128xf32>
    %cst_15 = arith.constant 0.000000e+00 : f32
    %44 = vector.broadcast %cst_15 : f32 to vector<8x128xf32>
    %45 = arith.cmpf ogt, %43, %44 : vector<8x128xf32>
    %cst_16 = arith.constant 1.000000e+00 : f32
    %46 = vector.broadcast %cst_16 : f32 to vector<8x128xf32>
    %47 = arith.select %45, %43, %46 : vector<8x128xi1>, vector<8x128xf32>
    %cst_17 = arith.constant 0.000000e+00 : f32
    %48 = vector.broadcast %cst_17 : f32 to vector<8x128xf32>
    %49 = arith.cmpf ogt, %43, %48 : vector<8x128xf32>
    %50 = arith.divf %36, %47 : vector<8x128xf32>
    %cst_18 = arith.constant 0.000000e+00 : f32
    %51 = vector.broadcast %cst_18 : f32 to vector<8x128xf32>
    %52 = arith.select %49, %50, %51 : vector<8x128xi1>, vector<8x128xf32>
    %cst_19 = arith.constant 0.000000e+00 : f32
    %53 = vector.broadcast %cst_19 : f32 to vector<8x1xf32>
    %54 = arith.cmpf ogt, %2, %53 : vector<8x1xf32>
    %cst_20 = arith.constant -1.000000e+00 : f32
    %55 = vector.shape_cast %54 : vector<8x1xi1> to vector<8x1xi1>
    %56 = vector.broadcast %55 : vector<8x1xi1> to vector<8x128xi1>
    %57 = vector.broadcast %cst_20 : f32 to vector<8x128xf32>
    %58 = arith.select %56, %52, %57 : vector<8x128xi1>, vector<8x128xf32>
    %59 = tpu.iota {dimensions = array<i32: 0>} : vector<8x128xi32>
    %60 = tpu.iota {dimensions = array<i32: 1>} : vector<8x128xi32>
    %cst_21 = arith.constant dense<0xFF800000> : vector<128xf32>
    %61 = vector.multi_reduction <maximumf>, %58, %cst_21 [0] : vector<8x128xf32> to vector<128xf32>
    %62 = vector.shape_cast %61 : vector<128xf32> to vector<1x128xf32>
    %63 = vector.broadcast %62 : vector<1x128xf32> to vector<8x128xf32>
    %64 = arith.cmpf oeq, %58, %63 : vector<8x128xf32>
    %c8_i32 = arith.constant 8 : i32
    %65 = vector.broadcast %c8_i32 : i32 to vector<8x128xi32>
    %66 = arith.select %64, %59, %65 : vector<8x128xi1>, vector<8x128xi32>
    %cst_22 = arith.constant dense<2147483647> : vector<128xi32>
    %67 = vector.multi_reduction <minsi>, %66, %cst_22 [0] : vector<8x128xi32> to vector<128xi32>
    %68 = vector.shape_cast %67 : vector<128xi32> to vector<1x128xi32>
    %cst_23 = arith.constant dense<0xFF800000> : vector<8xf32>
    %69 = vector.multi_reduction <maximumf>, %58, %cst_23 [1] : vector<8x128xf32> to vector<8xf32>
    %70 = vector.shape_cast %69 : vector<8xf32> to vector<8x1xf32>
    %71 = vector.broadcast %70 : vector<8x1xf32> to vector<8x128xf32>
    %72 = arith.cmpf oeq, %58, %71 : vector<8x128xf32>
    %c128_i32 = arith.constant 128 : i32
    %73 = vector.broadcast %c128_i32 : i32 to vector<8x128xi32>
    %74 = arith.select %72, %60, %73 : vector<8x128xi1>, vector<8x128xi32>
    %cst_24 = arith.constant dense<2147483647> : vector<8xi32>
    %75 = vector.multi_reduction <minsi>, %74, %cst_24 [1] : vector<8x128xi32> to vector<8xi32>
    %76 = vector.shape_cast %75 : vector<8xi32> to vector<8x1xi32>
    %77 = vector.broadcast %76 : vector<8x1xi32> to vector<8x128xi32>
    %78 = arith.cmpi eq, %60, %77 : vector<8x128xi32>
    %79 = vector.broadcast %54 : vector<8x1xi1> to vector<8x128xi1>
    %80 = arith.andi %78, %79 : vector<8x128xi1>
    %c-1_i32 = arith.constant -1 : i32
    %81 = vector.broadcast %c-1_i32 : i32 to vector<8x128xi32>
    %82 = arith.select %80, %59, %81 : vector<8x128xi1>, vector<8x128xi32>
    %cst_25 = arith.constant dense<-2147483648> : vector<128xi32>
    %83 = vector.multi_reduction <maxsi>, %82, %cst_25 [0] : vector<8x128xi32> to vector<128xi32>
    %84 = vector.shape_cast %83 : vector<128xi32> to vector<1x128xi32>
    %c0_i32 = arith.constant 0 : i32
    %85 = vector.broadcast %c0_i32 : i32 to vector<1x128xi32>
    %86 = arith.cmpi sge, %84, %85 : vector<1x128xi32>
    %87 = arith.select %86, %84, %68 : vector<1x128xi1>, vector<1x128xi32>
    %cst_26 = arith.constant 2.000000e+00 : f32
    %88 = vector.broadcast %cst_26 : f32 to vector<1x128xf32>
    %89 = arith.select %86, %88, %62 : vector<1x128xi1>, vector<1x128xf32>
    %90 = vector.broadcast %87 : vector<1x128xi32> to vector<8x128xi32>
    %91 = arith.cmpi eq, %59, %90 : vector<8x128xi32>
    %92 = arith.extui %91 : vector<8x128xi1> to vector<8x128xi32>
    %93 = arith.sitofp %92 : vector<8x128xi32> to vector<8x128xf32>
    %cst_27 = arith.constant dense<0.000000e+00> : vector<5x128xf32>
    %94 = tpu.matmul %1, %93, %cst_27 {dimension_numbers = #tpu.dot_dimension_numbers<[0], [0], [1], [1], [0, 1, 1, 1], [], []>} : vector<8x5xf32>, vector<8x128xf32>, vector<5x128xf32> -> vector<5x128xf32>
    %95 = vector.extract_strided_slice %94 {offsets = [0, 0], sizes = [1, 128], strides = [1, 1]} : vector<5x128xf32> to vector<1x128xf32>
    %96 = vector.extract_strided_slice %94 {offsets = [1, 0], sizes = [1, 128], strides = [1, 1]} : vector<5x128xf32> to vector<1x128xf32>
    %97 = vector.extract_strided_slice %94 {offsets = [2, 0], sizes = [1, 128], strides = [1, 1]} : vector<5x128xf32> to vector<1x128xf32>
    %98 = vector.extract_strided_slice %94 {offsets = [3, 0], sizes = [1, 128], strides = [1, 1]} : vector<5x128xf32> to vector<1x128xf32>
    %99 = vector.extract_strided_slice %94 {offsets = [4, 0], sizes = [1, 128], strides = [1, 1]} : vector<5x128xf32> to vector<1x128xf32>
    %cst_28 = arith.constant 5.000000e-01 : f32
    %100 = vector.broadcast %cst_28 : f32 to vector<1x128xf32>
    %101 = arith.cmpf olt, %89, %100 : vector<1x128xf32>
    %cst_29 = arith.constant 0.000000e+00 : f32
    %102 = vector.broadcast %cst_29 : f32 to vector<1x128xf32>
    %103 = arith.select %101, %102, %95 : vector<1x128xi1>, vector<1x128xf32>
    %cst_30 = arith.constant 5.000000e-01 : f32
    %104 = vector.broadcast %cst_30 : f32 to vector<1x128xf32>
    %105 = arith.addf %103, %104 : vector<1x128xf32>
    %106 = arith.fptosi %105 : vector<1x128xf32> to vector<1x128xi32>
    %c0_i32_31 = arith.constant 0 : i32
    %107 = vector.broadcast %c0_i32_31 : i32 to vector<1x128xi32>
    %108 = arith.cmpi sgt, %106, %107 : vector<1x128xi32>
    %109 = arith.extui %108 : vector<1x128xi1> to vector<1x128xi32>
    %110 = arith.sitofp %109 : vector<1x128xi32> to vector<1x128xf32>
    %111 = vector.shape_cast %110 : vector<1x128xf32> to vector<1x1x128xf32>
    %cst_32 = arith.constant dense<0.000000e+00> : vector<1xf32>
    %112 = vector.multi_reduction <add>, %111, %cst_32 [1, 2] : vector<1x1x128xf32> to vector<1xf32>
    %113 = vector.shape_cast %112 : vector<1xf32> to vector<1x1x1xf32>
    %114 = vector.extract %113[0, 0, 0] : f32 from vector<1x1x1xf32>
    %115 = arith.addf %96, %98 : vector<1x128xf32>
    %cst_33 = arith.constant 5.000000e-01 : f32
    %116 = vector.broadcast %cst_33 : f32 to vector<1x128xf32>
    %117 = arith.mulf %116, %115 : vector<1x128xf32>
    %118 = arith.addf %97, %99 : vector<1x128xf32>
    %cst_34 = arith.constant 5.000000e-01 : f32
    %119 = vector.broadcast %cst_34 : f32 to vector<1x128xf32>
    %120 = arith.mulf %119, %118 : vector<1x128xf32>
    %121 = arith.subf %98, %96 : vector<1x128xf32>
    %122 = arith.subf %99, %97 : vector<1x128xf32>
    %123 = arith.subf %117, %7 : vector<1x128xf32>
    %124 = arith.mulf %123, %14 : vector<1x128xf32>
    %125 = arith.subf %120, %8 : vector<1x128xf32>
    %126 = arith.mulf %125, %15 : vector<1x128xf32>
    %cst_35 = arith.constant 9.99999993E-9 : f32
    %127 = vector.broadcast %cst_35 : f32 to vector<1x128xf32>
    %128 = arith.maximumf %121, %127 : vector<1x128xf32>
    %129 = math.log %128 : vector<1x128xf32>
    %130 = arith.subf %129, %16 : vector<1x128xf32>
    %cst_36 = arith.constant 5.000000e+00 : f32
    %131 = vector.broadcast %cst_36 : f32 to vector<1x128xf32>
    %132 = arith.mulf %130, %131 : vector<1x128xf32>
    %cst_37 = arith.constant 9.99999993E-9 : f32
    %133 = vector.broadcast %cst_37 : f32 to vector<1x128xf32>
    %134 = arith.maximumf %122, %133 : vector<1x128xf32>
    %135 = math.log %134 : vector<1x128xf32>
    %136 = arith.subf %135, %17 : vector<1x128xf32>
    %cst_38 = arith.constant 5.000000e+00 : f32
    %137 = vector.broadcast %cst_38 : f32 to vector<1x128xf32>
    %138 = arith.mulf %136, %137 : vector<1x128xf32>
    %139 = tpu.concatenate %124, %126, %132, %138 in 0 : vector<1x128xf32>, vector<1x128xf32>, vector<1x128xf32>, vector<1x128xf32> -> vector<4x128xf32>
    %c0_39 = arith.constant 0 : index
    %c0_40 = arith.constant 0 : index
    %c0_41 = arith.constant 0 : index
    %140 = vector.load %arg3[%c0_39, %c0_40, %c0_41] : memref<1x4x128xf32, #tpu.memory_space<vmem>>, vector<1x4x128xf32>
    %141 = vector.shape_cast %140 : vector<1x4x128xf32> to vector<4x128xf32>
    %142 = arith.subf %141, %139 : vector<4x128xf32>
    %143 = math.absf %142 : vector<4x128xf32>
    %cst_42 = arith.constant 1.000000e+00 : f32
    %144 = vector.broadcast %cst_42 : f32 to vector<4x128xf32>
    %145 = arith.cmpf olt, %143, %144 : vector<4x128xf32>
    %cst_43 = arith.constant 5.000000e-01 : f32
    %146 = vector.broadcast %cst_43 : f32 to vector<4x128xf32>
    %147 = arith.mulf %146, %143 : vector<4x128xf32>
    %148 = arith.mulf %147, %143 : vector<4x128xf32>
    %cst_44 = arith.constant 5.000000e-01 : f32
    %149 = vector.broadcast %cst_44 : f32 to vector<4x128xf32>
    %150 = arith.subf %143, %149 : vector<4x128xf32>
    %151 = arith.select %145, %148, %150 : vector<4x128xi1>, vector<4x128xf32>
    %cst_45 = arith.constant 0.000000e+00 : f32
    %152 = vector.shape_cast %108 : vector<1x128xi1> to vector<1x128xi1>
    %153 = vector.broadcast %152 : vector<1x128xi1> to vector<4x128xi1>
    %154 = vector.broadcast %cst_45 : f32 to vector<4x128xf32>
    %155 = arith.select %153, %151, %154 : vector<4x128xi1>, vector<4x128xf32>
    %156 = vector.shape_cast %155 : vector<4x128xf32> to vector<1x4x128xf32>
    %cst_46 = arith.constant dense<0.000000e+00> : vector<1xf32>
    %157 = vector.multi_reduction <add>, %156, %cst_46 [1, 2] : vector<1x4x128xf32> to vector<1xf32>
    %158 = vector.shape_cast %157 : vector<1xf32> to vector<1x1x1xf32>
    %159 = vector.extract %158[0, 0, 0] : f32 from vector<1x1x1xf32>
    %c0_47 = arith.constant 0 : index
    %c0_48 = arith.constant 0 : index
    %c0_49 = arith.constant 0 : index
    %160 = vector.load %arg4[%c0_47, %c0_48, %c0_49] : memref<1x8x128xf32, #tpu.memory_space<vmem>>, vector<1x8x128xf32>
    %161 = vector.shape_cast %160 : vector<1x8x128xf32> to vector<8x128xf32>
    %cst_50 = arith.constant dense<0xFF800000> : vector<128xf32>
    %162 = vector.multi_reduction <maximumf>, %161, %cst_50 [0] : vector<8x128xf32> to vector<128xf32>
    %163 = vector.shape_cast %162 : vector<128xf32> to vector<1x128xf32>
    %164 = vector.broadcast %163 : vector<1x128xf32> to vector<8x128xf32>
    %165 = arith.subf %161, %164 : vector<8x128xf32>
    %166 = math.exp %165 : vector<8x128xf32>
    %cst_51 = arith.constant dense<0.000000e+00> : vector<128xf32>
    %167 = vector.multi_reduction <add>, %166, %cst_51 [0] : vector<8x128xf32> to vector<128xf32>
    %168 = vector.shape_cast %167 : vector<128xf32> to vector<1x128xf32>
    %169 = math.log %168 : vector<1x128xf32>
    %170 = arith.addf %169, %163 : vector<1x128xf32>
    %171 = tpu.iota {dimensions = array<i32: 0>} : vector<8x128xi32>
    %172 = vector.broadcast %106 : vector<1x128xi32> to vector<8x128xi32>
    %173 = arith.cmpi eq, %171, %172 : vector<8x128xi32>
    %cst_52 = arith.constant 0.000000e+00 : f32
    %174 = vector.broadcast %cst_52 : f32 to vector<8x128xf32>
    %175 = arith.select %173, %161, %174 : vector<8x128xi1>, vector<8x128xf32>
    %cst_53 = arith.constant dense<0.000000e+00> : vector<128xf32>
    %176 = vector.multi_reduction <add>, %175, %cst_53 [0] : vector<8x128xf32> to vector<128xf32>
    %177 = vector.shape_cast %176 : vector<128xf32> to vector<1x128xf32>
    %178 = arith.subf %170, %177 : vector<1x128xf32>
    %cst_54 = arith.constant 0.000000e+00 : f32
    %179 = vector.broadcast %cst_54 : f32 to vector<1x128xf32>
    %180 = arith.select %108, %179, %178 : vector<1x128xi1>, vector<1x128xf32>
    %cst_55 = arith.constant 0.000000e+00 : f32
    %181 = vector.broadcast %cst_55 : f32 to vector<1x128xf32>
    %182 = arith.maximumf %180, %181 : vector<1x128xf32>
    %183 = tpu.bitcast %182 : vector<1x128xf32> -> vector<1x128xi32>
    %cst_56 = arith.constant 3.000000e+00 : f32
    %184 = arith.mulf %cst_56, %114 : f32
    %cst_57 = arith.constant 1.270000e+02 : f32
    %185 = arith.minimumf %184, %cst_57 : f32
    %c0_i32_58 = arith.constant 0 : i32
    %c1073741824_i32 = arith.constant 1073741824 : i32
    %c0_i32_59 = arith.constant 0 : i32
    %c31_i32 = arith.constant 31 : i32
    %186 = arith.addi %c0_i32_59, %c31_i32 : i32
    %c1_i32 = arith.constant 1 : i32
    %187:2 = scf.for %arg8 = %c0_i32_59 to %186 step %c1_i32 iter_args(%arg9 = %c0_i32_58, %arg10 = %c1073741824_i32) -> (i32, i32)  : i32 {
      %221 = arith.ori %arg9, %arg10 : i32
      %222 = vector.broadcast %221 : i32 to vector<1x128xi32>
      %223 = arith.cmpi sge, %183, %222 : vector<1x128xi32>
      %224 = arith.extui %223 : vector<1x128xi1> to vector<1x128xi32>
      %225 = arith.sitofp %224 : vector<1x128xi32> to vector<1x128xf32>
      %226 = vector.shape_cast %225 : vector<1x128xf32> to vector<1x1x128xf32>
      %cst_78 = arith.constant dense<0.000000e+00> : vector<1xf32>
      %227 = vector.multi_reduction <add>, %226, %cst_78 [1, 2] : vector<1x1x128xf32> to vector<1xf32>
      %228 = vector.shape_cast %227 : vector<1xf32> to vector<1x1x1xf32>
      %229 = vector.extract %228[0, 0, 0] : f32 from vector<1x1x1xf32>
      %230 = arith.cmpf oge, %229, %185 : f32
      %231 = arith.select %230, %221, %arg9 : i32
      %c1_i32_79 = arith.constant 1 : i32
      %232 = arith.shrsi %arg10, %c1_i32_79 : i32
      scf.yield %231, %232 : i32, i32
    }
    %188 = vector.broadcast %187#0 : i32 to vector<1x128xi32>
    %189 = arith.cmpi sgt, %183, %188 : vector<1x128xi32>
    %190 = vector.broadcast %187#0 : i32 to vector<1x128xi32>
    %191 = arith.cmpi eq, %183, %190 : vector<1x128xi32>
    %192 = arith.extui %189 : vector<1x128xi1> to vector<1x128xi32>
    %193 = arith.sitofp %192 : vector<1x128xi32> to vector<1x128xf32>
    %194 = vector.shape_cast %193 : vector<1x128xf32> to vector<1x1x128xf32>
    %cst_60 = arith.constant dense<0.000000e+00> : vector<1xf32>
    %195 = vector.multi_reduction <add>, %194, %cst_60 [1, 2] : vector<1x1x128xf32> to vector<1xf32>
    %196 = vector.shape_cast %195 : vector<1xf32> to vector<1x1x1xf32>
    %197 = vector.extract %196[0, 0, 0] : f32 from vector<1x1x1xf32>
    %198 = arith.subf %185, %197 : f32
    %199 = tpu.iota {dimensions = array<i32: 1>} : vector<1x128xi32>
    %c0_i32_61 = arith.constant 0 : i32
    %c128_i32_62 = arith.constant 128 : i32
    %c0_i32_63 = arith.constant 0 : i32
    %c8_i32_64 = arith.constant 8 : i32
    %200 = arith.addi %c0_i32_63, %c8_i32_64 : i32
    %c1_i32_65 = arith.constant 1 : i32
    %201:2 = scf.for %arg8 = %c0_i32_63 to %200 step %c1_i32_65 iter_args(%arg9 = %c0_i32_61, %arg10 = %c128_i32_62) -> (i32, i32)  : i32 {
      %221 = arith.addi %arg9, %arg10 : i32
      %222 = vector.broadcast %221 : i32 to vector<1x128xi32>
      %223 = arith.cmpi slt, %199, %222 : vector<1x128xi32>
      %224 = arith.andi %191, %223 : vector<1x128xi1>
      %225 = arith.extui %224 : vector<1x128xi1> to vector<1x128xi32>
      %226 = arith.sitofp %225 : vector<1x128xi32> to vector<1x128xf32>
      %227 = vector.shape_cast %226 : vector<1x128xf32> to vector<1x1x128xf32>
      %cst_78 = arith.constant dense<0.000000e+00> : vector<1xf32>
      %228 = vector.multi_reduction <add>, %227, %cst_78 [1, 2] : vector<1x1x128xf32> to vector<1xf32>
      %229 = vector.shape_cast %228 : vector<1xf32> to vector<1x1x1xf32>
      %230 = vector.extract %229[0, 0, 0] : f32 from vector<1x1x1xf32>
      %231 = arith.cmpf ole, %230, %198 : f32
      %232 = arith.select %231, %221, %arg9 : i32
      %c1_i32_79 = arith.constant 1 : i32
      %233 = arith.shrsi %arg10, %c1_i32_79 : i32
      scf.yield %232, %233 : i32, i32
    }
    %202 = vector.broadcast %201#0 : i32 to vector<1x128xi32>
    %203 = arith.cmpi slt, %199, %202 : vector<1x128xi32>
    %204 = arith.andi %191, %203 : vector<1x128xi1>
    %205 = arith.ori %189, %204 : vector<1x128xi1>
    %cst_66 = arith.constant dense<true> : vector<1x128xi1>
    %206 = arith.xori %108, %cst_66 : vector<1x128xi1>
    %207 = arith.andi %205, %206 : vector<1x128xi1>
    %208 = arith.ori %108, %207 : vector<1x128xi1>
    %cst_67 = arith.constant 0.000000e+00 : f32
    %209 = vector.broadcast %cst_67 : f32 to vector<1x128xf32>
    %210 = arith.select %208, %178, %209 : vector<1x128xi1>, vector<1x128xf32>
    %211 = vector.shape_cast %210 : vector<1x128xf32> to vector<1x1x128xf32>
    %cst_68 = arith.constant dense<0.000000e+00> : vector<1xf32>
    %212 = vector.multi_reduction <add>, %211, %cst_68 [1, 2] : vector<1x1x128xf32> to vector<1xf32>
    %213 = vector.shape_cast %212 : vector<1xf32> to vector<1x1x1xf32>
    %214 = vector.extract %213[0, 0, 0] : f32 from vector<1x1x1xf32>
    %215 = vector.broadcast %159 : f32 to vector<1x1x1xf32>
    %c0_69 = arith.constant 0 : index
    %c0_70 = arith.constant 0 : index
    %c0_71 = arith.constant 0 : index
    %216 = vector.load %arg5[%c0_69, %c0_70, %c0_71] : memref<1x1x1xf32, #tpu.memory_space<vmem>>, vector<1x1x1xf32>
    tpu.vector_store %arg5[%c0_69, %c0_70, %c0_71], %215 {strides = array<i32>} : memref<1x1x1xf32, #tpu.memory_space<vmem>>, vector<1x1x1xf32>,
    %217 = vector.broadcast %214 : f32 to vector<1x1x1xf32>
    %c0_72 = arith.constant 0 : index
    %c0_73 = arith.constant 0 : index
    %c0_74 = arith.constant 0 : index
    %218 = vector.load %arg6[%c0_72, %c0_73, %c0_74] : memref<1x1x1xf32, #tpu.memory_space<vmem>>, vector<1x1x1xf32>
    tpu.vector_store %arg6[%c0_72, %c0_73, %c0_74], %217 {strides = array<i32>} : memref<1x1x1xf32, #tpu.memory_space<vmem>>, vector<1x1x1xf32>,
    %219 = vector.broadcast %114 : f32 to vector<1x1x1xf32>
    %c0_75 = arith.constant 0 : index
    %c0_76 = arith.constant 0 : index
    %c0_77 = arith.constant 0 : index
    %220 = vector.load %arg7[%c0_75, %c0_76, %c0_77] : memref<1x1x1xf32, #tpu.memory_space<vmem>>, vector<1x1x1xf32>
    tpu.vector_store %arg7[%c0_75, %c0_76, %c0_77], %219 {strides = array<i32>} : memref<1x1x1xf32, #tpu.memory_space<vmem>>, vector<1x1x1xf32>,
    return
  }
  func.func @transform_0(%arg0: i32) -> (i32, i32, i32) {
    %c0_i32 = arith.constant 0 : i32
    %c0_i32_0 = arith.constant 0 : i32
    %c0_i32_1 = arith.constant 0 : i32
    return %arg0, %c0_i32, %c0_i32_0 : i32, i32, i32
  }
  func.func @transform_1(%arg0: i32) -> (i32, i32) {
    %c0_i32 = arith.constant 0 : i32
    %c0_i32_0 = arith.constant 0 : i32
    %c0_i32_1 = arith.constant 0 : i32
    return %c0_i32, %c0_i32_0 : i32, i32
  }
  func.func @transform_2(%arg0: i32) -> (i32, i32, i32) {
    %c0_i32 = arith.constant 0 : i32
    %c0_i32_0 = arith.constant 0 : i32
    %c0_i32_1 = arith.constant 0 : i32
    return %arg0, %c0_i32, %c0_i32_0 : i32, i32, i32
  }
  func.func @transform_3(%arg0: i32) -> (i32, i32, i32) {
    %c0_i32 = arith.constant 0 : i32
    %c0_i32_0 = arith.constant 0 : i32
    %c0_i32_1 = arith.constant 0 : i32
    return %arg0, %c0_i32, %c0_i32_0 : i32, i32, i32
  }
  func.func @transform_4(%arg0: i32) -> (i32, i32, i32) {
    %c0_i32 = arith.constant 0 : i32
    %c0_i32_0 = arith.constant 0 : i32
    %c0_i32_1 = arith.constant 0 : i32
    return %arg0, %c0_i32, %c0_i32_0 : i32, i32, i32
  }
  func.func @transform_5(%arg0: i32) -> (i32, i32, i32) {
    %c0_i32 = arith.constant 0 : i32
    %c0_i32_0 = arith.constant 0 : i32
    %c0_i32_1 = arith.constant 0 : i32
    return %arg0, %c0_i32, %c0_i32_0 : i32, i32, i32
  }
  func.func @transform_6(%arg0: i32) -> (i32, i32, i32) {
    %c0_i32 = arith.constant 0 : i32
    %c0_i32_0 = arith.constant 0 : i32
    %c0_i32_1 = arith.constant 0 : i32
    return %arg0, %c0_i32, %c0_i32_0 : i32, i32, i32
  }
}

</mosaic_0001>

<bundles_post_ra>
// kernel: ssd_layer_loss.1
= control target key start
LH: loop header
LB: loop body
LE: loop exit
PB: predicated region body
PF: predicated region fallthrough
CT: control target
= control target key end

     0   :  { %s1149_s21 = smov 0   ;;  %s1361_s0 = inlined_call_operand.vmem [shape: f32[2,8,5], index: 0, kind: input, shape index: {}]   ;;  %s1362_s1 = inlined_call_operand.vmem [shape: f32[11,128], index: 1, kind: input, shape index: {}]   ;;  %s1363_s2 = inlined_call_operand.vmem [shape: f32[2,4,128], index: 2, kind: input, shape index: {}]   ;;  %s1364_s3 = inlined_call_operand.vmem [shape: f32[2,8,128], index: 3, kind: input, shape index: {}]   ;;  %s1365_s4 = inlined_call_operand.vmem [shape: f32[2,1,1], index: 4, kind: output, shape index: {0}]   ;;  %s1366_s5 = inlined_call_operand.vmem [shape: f32[2,1,1], index: 5, kind: output, shape index: {1}]   ;;  %s1367_s6 = inlined_call_operand.vmem [shape: f32[2,1,1], index: 6, kind: output, shape index: {2}]  }
   0x1 LB: > { %s916_s22 = sadd.s32 4294967295, %s1074_s21   ;;  %p920_p0 = scmp.ge.s32.totalorder %s1074_s21, 1  ;;  %s1074_s21 = sphi %s1149_s21, %s17_s21  }
   0x2   : > { %p234_p1 = scmp.lt.s32.totalorder %s1074_s21, 3 }
   0x4   : > { %p235_p2 = pnand %p920_p0, %p234_p1 }
   0x5   : > { %p275_p3 = scmp.lt.s32.totalorder (!%p235_p2), %s916_s22, 1  ;;  %v1100_v0 = vmov (!%p235_p2), 3   ;;  %v1101_v1 = vmov (!%p235_p2), 4   ;;  %s1102_s12 = smov (!%p235_p2), 2   ;;  %v1103_v3 = vmov (!%p235_p2), 1   ;;  %v1104_v4 = vmov (!%p235_p2), 2  }
   0x6   : > { %238 = sbr.rel (%p235_p2) target bundleno = 2159 (0x86f), region = 36  ;;  %1030 = vset.pattern.permute.xlu1 (!%p235_p2), %v1100_v0  ;;  %1032 = vset.pattern.permute.xlu0 (!%p235_p2), %v1101_v1  ;;  %s1105_s13 = smov (!%p235_p2), 127   ;;  %v1106_v7 = vmov (!%p235_p2), 0   ;;  %v924_v13 = vld [vmem:[%s1362_s1 + $0x4] ss:$0 sm:$0xff] (!%p235_p2)  ;;  %v382_v38 = vlaneseq (!%p235_p2)  ;;  %v1107_v48 = vmov (!%p235_p2), 0.0  }
   0x7   : > { %v925_v14 = vld [vmem:[%s1362_s1 + $0x2] ss:$0 sm:$0xff] (!%p235_p2)  ;;  %v927_v15 = vld [vmem:[%s1362_s1 + $0x3] ss:$0 sm:$0xff] (!%p235_p2)  ;;  %v926_v17 = vld [vmem:[%s1362_s1 + $0x5] ss:$0 sm:$0xff] (!%p235_p2)  ;;  %941 = vmatprep.subr.mxu0 (!%p235_p2), %v1107_v48 }
   0x8   : > { %v928_v27 = vld [vmem:[%s1362_s1 + $0x6] ss:$0 sm:$0xff] (!%p235_p2)  ;;  %v1195_v39 = vand.u32 (!%p235_p2), 127, %v382_v38  ;;  %vm1108_vm5 = vmmov (!%p235_p2), 0   ;;  %v1200_v55 = vshrl.u32 (!%p235_p2), %v382_v38, 7  ;;  %s1272_s9 = smov (!%p235_p2), 1073741824  }
   0x9   : > { %943 = vmatprep.mubr.msk.f32.mxu0 (!%p235_p2), %vm1108_vm5, %v1107_v48  ;;  %s1274_s10 = smov (!%p235_p2), 0  }
   0xd   : > { %s1375_s22 = smov (!%p275_p3, %s916_s22), 1 }
   0xe   : > { %s921_s23 = sshll.u32 %s1375_s22, 3  ;;  %s289_s26 = scalar_lea.vmem %s1365_s4, %s1375_s22 }
   0xf   : > { %s278_s29 = scalar_lea.vmem %s1361_s0, %s921_s23  ;;  %s292_s8 = scalar_lea.vmem %s1366_s5, %s1375_s22 }
  0x10   : > { %s295_s11 = scalar_lea.vmem %s1367_s6, %s1375_s22  ;;  %v296_v2 = vld [vmem:[%s278_s29] sm:$0xff]  ;;  %s286_s30 = scalar_lea.vmem %s1364_s3, %s921_s23 }
  0x11   : > { %350 = vrot.lane.b32.xlu0 %v296_v2, %s1102_s12  ;;  %310 = vperm.xlu1 %1030, %v296_v2   ;;  %vm375_vm0 = vcmp.gt.f32.partialorder %v296_v2, 0.0  ;;  %s922_s20 = sshll.u32 %s1375_s22, 2  ;;  %s1276_s12 = smov 0  }
  0x12   : > { %v376_v8 = vsel %vm375_vm0, 1, %v1106_v7  ;;  %vm471_vm0 = vcmask 64512   ;;  %s282_s27 = scalar_lea.vmem %s1363_s2, %s922_s20 }
  0x15   : > { %1031 = vset.pattern.permute.xlu1 %v1103_v3 }
  0x16   : > { %319 = vperm.xlu1 %1031, %v296_v2  }
  0x1a   : > { %1033 = vset.pattern.permute.xlu1 %v1104_v4 }
  0x1b   : > { %339 = vperm.xlu1 %1033, %v296_v2  }
  0x1f   : > { %1034 = vset.pattern.permute.xlu1 %v1100_v0 }
  0x83   : > { %v351_v5 = vpop.permute.xlu0 %350 }
  0x84   : > { %v353_v6 = vsub.f32 %v296_v2, %v351_v5 }
  0x86   : > { %355 = vrot.lane.b32.xlu0 %v353_v6, %s1105_s13 }
  0x8a   : > { %330 = vperm.xlu0 %1032, %v296_v2  }
  0x8e   : > { %1035 = vset.pattern.permute.xlu0 %v1106_v7 }
  0x8f   : > { %378 = vperm.xlu0 %1035, %v376_v8  }
  0x90   : > { %v311_v11 = vpop.permute.xlu1 %310 }
  0x91   : > { %v317_v19 = vmin.f32 %v311_v11, %v924_v13 }
  0x95   : > { %v320_v12 = vpop.permute.xlu1 %319 }
  0x96   : > { %v326_v20 = vmax.f32 %v320_v12, %v925_v14  ;;  %v1109_v14 = vmov 1.0  }
  0x98   : > { %v327_v23 = vsub.f32 %v317_v19, %v326_v20 }
  0x9a   : > { %v340_v16 = vpop.permute.xlu1 %339  ;;  %v328_v25 = vmax.f32 %v327_v23, 0.0 }
  0x9b   : > { %v346_v21 = vmax.f32 %v340_v16, %v927_v15  ;;  %v642_v15 = vld [vmem:[%s286_s30] sm:$0xff]  ;;  %s1110_s30 = smov 127.0  }
  0x9c   : > { %v643_v16 = vrot.slane %v642_v15, 4 }
  0xf8   : > { %v356_v9 = vpop.permute.xlu0 %355 }
  0xf9   : > { %v358_v10 = vmul.f32 %v356_v9, %v353_v6 }
  0xfb   : > { %361 = vperm.xlu1 %1034, %v358_v10  }
 0x109   : > { %v331_v18 = vpop.permute.xlu0 %330 }
 0x10a   : > { %v337_v22 = vmin.f32 %v331_v18, %v926_v17  ;;  %v644_v17 = vmax.f32 %v642_v15, %v643_v16 }
 0x10c   : > { %v347_v24 = vsub.f32 %v337_v22, %v346_v21  ;;  %v645_v18 = vrot.slane %v644_v17, 2 }
 0x10e   : > { %v348_v26 = vmax.f32 %v347_v24, 0.0  ;;  %v379_v33 = vpop.permute.xlu0 %378  ;;  %v646_v19 = vmax.f32 %v644_v17, %v645_v18 }
 0x10f   : > { %vm380_vm2 = vcmp.eq.s32.totalorder %v379_v33, 1 }
 0x110   : > { %v349_v29 = vmul.f32 %v348_v26, %v328_v25  ;;  %v647_v20 = vrot.slane %v646_v19, 1 }
 0x112   : > { %v1213_v21 = vmax.f32 %v646_v19, %v647_v20 }
 0x114   : > { %v649_v22 = vsub.f32 %v642_v15, %v1213_v21 }
 0x116   : > { %v650_v23 = vmul.f32 1.442695, %v649_v22 }
 0x17a   : > { %v362_v28 = vpop.permute.xlu1 %361 }
 0x17b   : > { %v368_v30 = vadd.f32 %v928_v27, %v362_v28 }
 0x17d   : > { %v369_v31 = vsub.f32 %v368_v30, %v349_v29 }
 0x17f   : > { %vm370_vm1 = vcmp.gt.f32.partialorder %v369_v31, 0.0 }
 0x180   : > { %v371_v32 = vsel %vm370_vm1, %v369_v31, 1.0 }
 0x181   : > { %1036 = vrcp.f32 %v371_v32 }
 0x182   : > { %1038 = vpow2.f32 %v650_v23 }
 0x18b   : > { %v1037_v34 = vpop.eup %1036 }
 0x18c   : > { %v373_v35 = vmul.f32 %v1037_v34, %v349_v29  ;;  %v1039_v24 = vpop.eup %1038 }
 0x18d   : > { %v652_v25 = vrot.slane %v1039_v24, 4 }
 0x18e   : > { %v374_v36 = vsel %vm370_vm1, %v373_v35, 0.0 }
 0x18f   : > { %v381_v37 = vsel %vm380_vm2, %v374_v36, -1.0  ;;  %v653_v26 = vadd.f32 %v1039_v24, %v652_v25 }
 0x190   : > { %403 = vmax.xlane.f32.xlu1 %v381_v37  ;;  %v386_v49 = vrot.slane %v381_v37, 4 }
 0x191   : > { %v654_v27 = vrot.slane %v653_v26, 2 }
 0x192   : > { %v387_v50 = vmax.f32 %v381_v37, %v386_v49 }
 0x193   : > { %v655_v28 = vadd.f32 %v654_v27, %v653_v26  ;;  %v617_v27 = vld [vmem:[%s282_s27] sm:$0xf] }
 0x194   : > { %v388_v51 = vrot.slane %v387_v50, 2 }
 0x195   : > { %v656_v29 = vrot.slane %v655_v28, 1 }
 0x196   : > { %v389_v52 = vmax.f32 %v387_v50, %v388_v51 }
 0x197   : > { %v657_v31 = vadd.f32 %v656_v29, %v655_v28 }
 0x198   : > { %v390_v53 = vrot.slane %v389_v52, 1 }
 0x199   : > { %1040 = vlog2.f32 %v657_v31 }
 0x19a   : > { %v391_v54 = vmax.f32 %v389_v52, %v390_v53  ;;  %v304_v53 = vld [vmem:[%s1362_s1 + $0x7] sm:$0x1] }
 0x19c   : > { %vm392_vm6 = vcmp.eq.f32.partialorder %v381_v37, %v391_v54 }
 0x19d   : > { %v393_v56 = vsel %vm392_vm6, %v1200_v55, 8  ;;  %vm613_vm6 = vcmask 1041408  }
 0x19e   : > { %v394_v57 = vrot.slane %v393_v56, 4 }
 0x1a0   : > { %vm395_vm7 = vcmp.lt.s32.totalorder %v393_v56, %v394_v57 }
 0x1a1   : > { %v396_v60 = vsel %vm395_vm7, %v393_v56, %v394_v57  ;;  %vm615_vm7 = vcmask 1042432  }
 0x1a2   : > { %v397_v0 = vrot.slane %v396_v60, 2 }
 0x1a4   : > { %vm398_vm10 = vcmp.lt.s32.totalorder %v396_v60, %v397_v0 }
 0x1a5   : > { %v399_v3 = vsel %vm398_vm10, %v396_v60, %v397_v0  ;;  %v306_v60 = vld [vmem:[%s1362_s1 + $0x9] sm:$0x1] }
 0x1a6   : > { %v400_v6 = vrot.slane %v399_v3, 1 }
 0x1a8   : > { %vm401_vm13 = vcmp.lt.s32.totalorder %v399_v3, %v400_v6 }
 0x1a9   : > { %v402_v11 = vsel %vm401_vm13, %v399_v3, %v400_v6  ;;  %v591_v3 = vrot.slane %v306_v60, 5 }
 0x21d   : > { %v404_v40 = vpop.xlane.xlu1 %403 }
 0x21e   : > { %vm405_vm3 = vcmp.eq.f32.partialorder %v381_v37, %v404_v40 }
 0x21f   : > { %v406_v41 = vsel %vm405_vm3, %v1195_v39, 128  ;;  %vm552_vm3 = vcmask 1040384  }
 0x220   : > { %v408_v42 = vshra.s32 %v406_v41, 16  ;;  %v407_v44 = vand.u32 65535, %v406_v41  ;;  %v627_v41 = vsub.s32 0, %v1200_v55 }
 0x222   : > { %v410_v43 = vcvt.s32.f32 %v408_v42  ;;  %v409_v46 = vcvt.s32.f32 %v407_v44  ;;  %v297_v44 = vld [vmem:[%s1362_s1] sm:$0x1] }
 0x223   : > { %v572_v51 = vrot.slane %v297_v44, 7 }
 0x224   : > { %411 = vmin.xlane.f32.xlu0 %v410_v43 }
 0x251   : > { %439 = vxpose.xlu0.b32.start.end [1/1] (short) (narrow) %v296_v2, 8 }
 0x2b1   : > { %v412_v45 = vpop.xlane.xlu0 %411 }
 0x2b2   : > { %vm413_vm4 = vcmp.eq.f32.partialorder %v410_v43, %v412_v45  ;;  %v418_v58 = vcvt.f32.s32 %v412_v45  ;;  %v298_v45 = vld [vmem:[%s1362_s1 + $0x1] sm:$0x1] }
 0x2b3   : > { %v414_v47 = vsel %vm413_vm4, %v409_v46, inf  ;;  %v580_v52 = vrot.slane %v298_v45, 6 }
 0x2b4   : > { %415 = vmin.xlane.f32.xlu1 %v414_v47  ;;  %v419_v61 = vshll.u32 %v418_v58, 16 }
 0x2d1   : > { %v455_v12 = vpop.trf.xlu0 }
 0x341   : > { %v416_v59 = vpop.xlane.xlu1 %415 }
 0x342   : > { %v417_v62 = vcvt.f32.s32 %v416_v59  ;;  %v1041_v59 = vpop.eup %1040 }
 0x344   : > { %v420_v63 = vadd.s32 %v419_v61, %v417_v62  ;;  %v307_v61 = vld [vmem:[%s1362_s1 + $0xa] sm:$0x1] }
 0x346   : > { %vm421_vm8 = vcmp.eq.s32.totalorder %v1195_v39, %v420_v63  ;;  %v576_v63 = vrot.slane %v304_v53, 7 }
 0x347   : > { %vm422_vm9 = vmand %vm421_vm8, %vm380_vm2 }
 0x348   : > { %v423_v1 = vsel %vm422_vm9, %v1200_v55, 4294967295  ;;  %vm631_vm9 = vcmask 1043456  }
 0x349   : > { %v424_v2 = vrot.slane %v423_v1, 4 }
 0x34b   : > { %vm425_vm11 = vcmp.gt.s32.totalorder %v423_v1, %v424_v2 }
 0x34c   : > { %v426_v4 = vsel %vm425_vm11, %v423_v1, %v424_v2 }
 0x34d   : > { %v427_v5 = vrot.slane %v426_v4, 2 }
 0x34f   : > { %vm428_vm12 = vcmp.gt.s32.totalorder %v426_v4, %v427_v5 }
 0x350   : > { %v429_v8 = vsel %vm428_vm12, %v426_v4, %v427_v5  ;;  %v596_v4 = vrot.slane %v307_v61, 4  ;;  %v659_v5 = vmul.f32 0.6931472, %v1041_v59 }
 0x351   : > { %v430_v9 = vrot.slane %v429_v8, 1 }
 0x353   : > { %vm431_vm14 = vcmp.gt.s32.totalorder %v429_v8, %v430_v9 }
 0x354   : > { %v432_v10 = vsel %vm431_vm14, %v429_v8, %v430_v9 }
 0x355   : > { %vm433_vm15 = vcmp.ge.s32.totalorder %v432_v10, 0 }
 0x356   : > { %v434_v13 = vsel %vm433_vm15, %v432_v10, %v402_v11  ;;  %v435_v30 = vsel %vm433_vm15, 2.0, %v391_v54  ;;  %v305_v54 = vld [vmem:[%s1362_s1 + $0x8] sm:$0x1] }
 0x357   : > { %vm436_vm1 = vcmp.eq.s32.totalorder %v1200_v55, %v434_v13  ;;  %vm545_vm2 = vcmp.lt.f32.partialorder %v435_v30, 0.5  ;;  %v584_v1 = vrot.slane %v305_v54, 6 }
 0x358   : > { %942 = vmatpush3.msk.msra.mxu0 %vm436_vm1, %v1109_v14 }
 0x359   : > { %944 = vmatmul.mubr.msk.f32.vlgmr.msra.gmra.mrb[0].mxu0 %vm471_vm0, %v455_v12 }
 0x42c   : > { %v541_v32 = vpop.f32.mrb[0].mxu0 }
 0x42d   : > { %v564_v33 = vrot.slane %v541_v32, 2  ;;  %v568_v34 = vrot.slane %v541_v32, 6  ;;  %v945_v35 = vpop.f32.mrb[1].mxu0  ;;  %v546_v36 = vsel %vm545_vm2, 0.0, %v541_v32 }
 0x42e   : > { %v547_v37 = vadd.f32 0.5, %v546_v36 }
 0x42f   : > { %v570_v38 = vsub.f32 %v541_v32, %v568_v34  ;;  %v566_v42 = vadd.f32 %v564_v33, %v541_v32 }
 0x430   : > { %v946_v40 = vtrunc.f32 %v547_v37 }
 0x431   : > { %v587_v43 = vmax.f32 %v570_v38, 1e-08  ;;  %v567_v49 = vmul.f32 0.5, %v566_v42 }
 0x432   : > { %v1224_v46 = vcvt.f32.s32 %v946_v40 }
 0x433   : > { %1042 = vlog2.f32 %v587_v43  ;;  %v574_v62 = vsub.f32 %v567_v49, %v572_v51  ;;  %v582_v0 = vsub.f32 %v567_v49, %v580_v52 }
 0x434   : > { %vm549_vm4 = vcmp.gt.s32.totalorder %v1224_v46, 0  ;;  %v664_v47 = vrot.slane %v1224_v46, %v627_v41 }
 0x435   : > { %v932_v50 = vsel %vm549_vm4, 1.0, %v1107_v48  ;;  %v578_v9 = vmul.f32 %v576_v63, %v574_v62  ;;  %v586_v10 = vmul.f32 %v584_v1, %v582_v0  ;;  %v550_v32 = vsel %vm549_vm4, 1, %v1106_v7 }
 0x436   : > { %v553_v56 = vsel %vm552_vm3, %v932_v50, 0.0  ;;  %vm665_vm5 = vcmp.eq.s32.totalorder %v1200_v55, %v664_v47  ;;  %v628_v35 = vrot.slane %v550_v32, %v627_v41 }
 0x437   : > { %554 = vadd.xlane.f32.xlu1 %v553_v56  ;;  %v666_v57 = vsel %vm665_vm5, %v642_v15, 0.0  ;;  %v660_v15 = vadd.f32 %v659_v5, %v1213_v21  ;;  %v601_v17 = vrot.slane %v578_v9, 1  ;;  %v604_v18 = vrot.slane %v586_v10, 1 }
 0x438   : > { %v667_v58 = vrot.slane %v666_v57, 4  ;;  %vm629_vm10 = vcmp.eq.s32.totalorder %v628_v35, 1 }
 0x439   : > { %v612_v26 = vsel %vm552_vm3, %v601_v17, %v604_v18 }
 0x43a   : > { %v668_v2 = vadd.f32 %v667_v58, %v666_v57 }
 0x43c   : > { %v669_v6 = vrot.slane %v668_v2, 2 }
 0x43d   : > { %v1043_v8 = vpop.eup %1042 }
 0x43e   : > { %v589_v11 = vmul.f32 0.6931472, %v1043_v8  ;;  %v670_v12 = vadd.f32 %v669_v6, %v668_v2 }
 0x440   : > { %v593_v13 = vsub.f32 %v589_v11, %v591_v3  ;;  %v598_v14 = vsub.f32 %v589_v11, %v596_v4  ;;  %v671_v16 = vrot.slane %v670_v12, 1 }
 0x442   : > { %v594_v19 = vmul.f32 5.0, %v593_v13  ;;  %v599_v20 = vmul.f32 5.0, %v598_v14  ;;  %v672_v22 = vadd.f32 %v671_v16, %v670_v12 }
 0x444   : > { %v607_v23 = vrot.slane %v594_v19, 1  ;;  %v610_v24 = vrot.slane %v599_v20, 1  ;;  %v1252_v25 = vsub.f32 %v660_v15, %v672_v22 }
 0x446   : > { %v614_v21 = vsel %vm613_vm6, %v612_v26, %v607_v23  ;;  %v674_v28 = vsel %vm549_vm4, 0.0, %v1252_v25 }
 0x447   : > { %v616_v29 = vsel %vm615_vm7, %v614_v21, %v610_v24  ;;  %v1258_v30 = vmax.f32 %v674_v28, 0.0 }
 0x448   : > { %v618_v31 = vsub.f32 %v617_v27, %v616_v29 }
 0x44a   : > { %v619_v33 = vand.u32 2147483647, %v618_v31 }
 0x44c   : > { %v621_v34 = vmul.f32 0.5, %v619_v33  ;;  %v933_v37 = vadd.f32 -0.5, %v619_v33  ;;  %vm620_vm8 = vcmp.lt.f32.partialorder %v619_v33, 1.0 }
 0x44e   : > { %v622_v36 = vmul.f32 %v621_v34, %v619_v33 }
 0x450   : > { %v624_v38 = vsel %vm620_vm8, %v622_v36, %v933_v37 }
 0x451   : > { %v630_v40 = vsel %vm629_vm10, %v624_v38, 0.0 }
 0x452   : > { %v632_v42 = vsel %vm631_vm9, %v630_v40, 0.0 }
 0x453   : > { %633 = vadd.xlane.f32.xlu1 %v632_v42 }
 0x4c4   : > { %v555_v43 = vpop.xlane.xlu1 %554 }
 0x4c5   : > { %v556_v44 = vrot.slane %v555_v43, 4 }
 0x4c7   : > { %v557_v45 = vadd.f32 %v556_v44, %v555_v43 }
 0x4c9   : > { %v558_v47 = vrot.slane %v557_v45, 2 }
 0x4cb   : > { %v559_v49 = vadd.f32 %v558_v47, %v557_v45 }
 0x4cd   : > { %v560_v7 = vrot.slane %v559_v49, 1 }
 0x4cf   : > { %v561_v50 = vadd.f32 %v560_v7, %v559_v49 }
 0x4d1   : > { %948 = vpush %v561_v50 }
 0x4e0   : > { %v634_v51 = vpop.xlane.xlu1 %633 }
 0x4e1   : > { %v635_v55 = vrot.slane %v634_v51, 4 }
 0x4e3   : > { %v636_v41 = vadd.f32 %v635_v55, %v634_v51 }
 0x4e5   : > { %v637_v52 = vrot.slane %v636_v41, 2 }
 0x4e7   : > { %v638_v53 = vadd.f32 %v637_v52, %v636_v41 }
 0x4e9   : > { %v639_v54 = vrot.slane %v638_v53, 1 }
 0x4eb   : > { %v640_v56 = vadd.f32 %v639_v54, %v638_v53 }
 0x4ed   : > { %950 = vpush %v640_v56 }
 0x502   : > { %s1265_s28 = spop %948 }
 0x503   : > { %s677_s29 = smul.f32 3.0, %s1265_s28 }
 0x505   : > { %s1268_s23 = smin.f32 %s1110_s30, %s677_s29 }
 0x51e   : > { %s1270_s7 = spop %950 }
 0x51f LB: >> { %s687_s13 = sor.u32 %s1078_s9, %s1082_s10  ;;  %s704_s9 = sshra.s32 %s1078_s9, 1   ;;  %v1111_v58 = vmov 0.0   ;;  %s1086_s12 = sphi %s1276_s12, %s684_s12   ;;  %s1082_s10 = sphi %s1274_s10, %s1368_s10   ;;  %s1078_s9 = sphi %s1272_s9, %s704_s9  }
 0x520   : >> { %v688_v57 = vstv %s687_s13  ;;  %s684_s12 = sadd.s32 1, %s1086_s12  }
 0x521   : >> { %vm689_vm11 = vcmp.ge.s32.totalorder %v1258_v30, %v688_v57  ;;  %p681_p5 = scmp.ge.s32.totalorder %s684_s12, 31  }
 0x522   : >> { %v934_v59 = vsel %vm689_vm11, 1.0, %v1111_v58  ;;  %s1308_s17 = smov (%p681_p5), 128   ;;  %s1310_s18 = smov (%p681_p5), 0  }
 0x523   : >> { %v692_v60 = vsel %vm552_vm3, %v934_v59, 0.0  ;;  %s1312_s19 = smov (%p681_p5), 0  }
 0x524   : >> { %693 = vadd.xlane.f32.xlu0 %v692_v60 }
 0x5b1   : >> { %v694_v61 = vpop.xlane.xlu0 %693 }
 0x5b2   : >> { %v695_v62 = vrot.slane %v694_v61, 4 }
 0x5b4   : >> { %v696_v63 = vadd.f32 %v695_v62, %v694_v61 }
 0x5b6   : >> { %v697_v0 = vrot.slane %v696_v63, 2 }
 0x5b8   : >> { %v698_v1 = vadd.f32 %v697_v0, %v696_v63 }
 0x5ba   : >> { %v699_v2 = vrot.slane %v698_v1, 1 }
 0x5bc   : >> { %v700_v3 = vadd.f32 %v699_v2, %v698_v1 }
 0x5be   : >> { %952 = vpush %v700_v3 }
 0x5ed   : > { %683 = sbr.rel (!%p681_p5) target bundleno = 1311 (0x51f), region = 110 }
 0x5ef   : >> { %s953_s14 = spop %952 }
 0x5f0   : >> { %p702_p4 = scmp.ge.f32.partialorder %s953_s14, %s1268_s23 }
 0x5f2   : >> { %s1377_s13 = smov (!%p702_p4, %s687_s13), %s1082_s10 }
 0x5f3   : >> { %s1368_s10 = smov %s1377_s13  ;;  %v705_v4 = vstv (%p681_p5), %s1377_s13 }
 0x5f4   : > { %vm1291_vm12 = vcmp.gt.s32.totalorder %v1258_v30, %v705_v4  ;;  %vm1296_vm13 = vcmp.eq.s32.totalorder %v1258_v30, %v705_v4 }
 0x5f5   : > { %v935_v8 = vsel %vm1291_vm12, 1.0, %v1107_v48 }
 0x5f6   : > { %v710_v9 = vsel %vm552_vm3, %v935_v8, 0.0 }
 0x5f7   : > { %711 = vadd.xlane.f32.xlu0 %v710_v9 }
 0x684   : > { %v712_v10 = vpop.xlane.xlu0 %711 }
 0x685   : > { %v713_v11 = vrot.slane %v712_v10, 4 }
 0x687   : > { %v714_v12 = vadd.f32 %v713_v11, %v712_v10 }
 0x689   : > { %v715_v13 = vrot.slane %v714_v12, 2 }
 0x68b   : > { %v716_v14 = vadd.f32 %v715_v13, %v714_v12 }
 0x68d   : > { %v717_v15 = vrot.slane %v716_v14, 1 }
 0x68f   : > { %v718_v16 = vadd.f32 %v717_v15, %v716_v14 }
 0x691   : > { %954 = vpush %v718_v16 }
 0x6c2   : > { %s1304_s15 = spop %954 }
 0x6c3   : > { %s720_s16 = ssub.f32 %s1268_s23, %s1304_s15 }
 0x6c4 LB: >> { %s729_s20 = sadd.s32 %s1090_s17, %s1094_s18  ;;  %s747_s17 = sshra.s32 %s1090_s17, 1   ;;  %v1112_v17 = vmov 0.0   ;;  %s1098_s19 = sphi %s1312_s19, %s726_s19   ;;  %s1094_s18 = sphi %s1310_s18, %s1373_s18   ;;  %s1090_s17 = sphi %s1308_s17, %s747_s17  }
 0x6c5   : >> { %v730_v48 = vstv %s729_s20  ;;  %s726_s19 = sadd.s32 1, %s1098_s19  }
 0x6c6   : >> { %vm731_vm14 = vcmp.lt.s32.totalorder %v1195_v39, %v730_v48  ;;  %p723_p7 = scmp.ge.s32.totalorder %s726_s19, 8  }
 0x6c7   : >> { %vm732_vm15 = vmand %vm1296_vm13, %vm731_vm14  ;;  %vm1113_vm1 = vmmov (%p723_p7), 1   ;;  %vm767_vm9 = vcmask (%p723_p7), 0   ;;  %v771_v31 = vstv (%p723_p7), %s1265_s28 }
 0x6c8   : >> { %v936_v18 = vsel %vm732_vm15, 1.0, %v1112_v17  ;;  %vm752_vm2 = vmxor (%p723_p7), %vm549_vm4, %vm1113_vm1  ;;  %772 = vst.msk [vmem:[%s295_s11] sm:$0x1] (%p723_p7), %vm767_vm9, %v771_v31 }
 0x6c9   : >> { %v735_v19 = vsel %vm552_vm3, %v936_v18, 0.0 }
 0x6ca   : >> { %736 = vadd.xlane.f32.xlu0 %v735_v19 }
 0x757   : >> { %v737_v20 = vpop.xlane.xlu0 %736 }
 0x758   : >> { %v738_v22 = vrot.slane %v737_v20, 4 }
 0x75a   : >> { %v739_v23 = vadd.f32 %v738_v22, %v737_v20 }
 0x75c   : >> { %v740_v24 = vrot.slane %v739_v23, 2 }
 0x75e   : >> { %v741_v26 = vadd.f32 %v740_v24, %v739_v23 }
 0x760   : >> { %v742_v27 = vrot.slane %v741_v26, 1 }
 0x762   : >> { %v743_v21 = vadd.f32 %v742_v27, %v741_v26 }
 0x764   : >> { %956 = vpush %v743_v21 }
 0x793   : > { %725 = sbr.rel (!%p723_p7) target bundleno = 1732 (0x6c4), region = 121 }
 0x795   : >> { %s957_s24 = spop %956 }
 0x796   : >> { %p745_p6 = scmp.le.f32.partialorder %s957_s24, %s720_s16 }
 0x798   : >> { %s1379_s20 = smov (!%p745_p6, %s729_s20), %s1094_s18 }
 0x799   : >> { %s1373_s18 = smov %s1379_s20  ;;  %v748_v28 = vstv (%p723_p7), %s1379_s20 }
 0x79a   : > { %vm749_vm0 = vcmp.lt.s32.totalorder %v1195_v39, %v748_v28  ;;  %v766_v39 = vstv %s1270_s7 }
 0x79b   : > { %vm750_vm5 = vmand %vm1296_vm13, %vm749_vm0  ;;  %768 = vst.msk [vmem:[%s289_s26] sm:$0x1] %vm767_vm9, %v766_v39 }
 0x79c   : > { %vm751_vm6 = vmor %vm1291_vm12, %vm750_vm5 }
 0x79d   : > { %vm753_vm7 = vmand %vm751_vm6, %vm752_vm2 }
 0x79e   : > { %vm754_vm8 = vmor %vm549_vm4, %vm753_vm7 }
 0x79f   : > { %v755_v29 = vsel %vm754_vm8, %v1252_v25, 0.0 }
 0x7a0   : > { %v756_v30 = vsel %vm552_vm3, %v755_v29, 0.0 }
 0x7a1   : > { %757 = vadd.xlane.f32.xlu0 %v756_v30 }
 0x82e   : > { %v758_v46 = vpop.xlane.xlu0 %757 }
 0x82f   : > { %v759_v32 = vrot.slane %v758_v46, 4 }
 0x831   : > { %v760_v25 = vadd.f32 %v759_v32, %v758_v46 }
 0x833   : > { %v761_v33 = vrot.slane %v760_v25, 2 }
 0x835   : > { %v762_v34 = vadd.f32 %v761_v33, %v760_v25 }
 0x837   : > { %v763_v35 = vrot.slane %v762_v34, 1 }
 0x839   : > { %v764_v36 = vadd.f32 %v763_v35, %v762_v34 }
 0x83b   : > { %958 = vpush %v764_v36 }
 0x86c   : > { %s959_s23 = spop %958 }
 0x86d   : > { %v769_v37 = vstv %s959_s23 }
 0x86e   : > { %770 = vst.msk [vmem:[%s292_s8] sm:$0x1] %vm767_vm9, %v769_v37 }
 0x86f PF: > { %s17_s21 = sadd.s32 1, %s1074_s21  }
 0x870   : > { %p14_p8 = scmp.ge.s32.totalorder %s17_s21, 4  }
 0x872   :  { %16 = sbr.rel (!%p14_p8) target bundleno = 1 (0x1), region = 132 }

</bundles_post_ra>
